<compile_context>
chip_gen: v7x
topology: tpu7x:2x2x1
jax: 0.10.0
libtpu: 0.0.40
codegen_flags: <defaults>
</compile_context>

<pallas_src>
import functools

import jax
import jax.numpy as jnp
from jax.experimental import pallas as pl
from jax.experimental.pallas import tpu as pltpu


# ------------------------------ small helpers -------------------------------

def _cdiv(a, b):
    return -(-a // b)


def _sublane_align(*dtypes):
    # Second-to-last block-dim alignment for packed-sublane layouts.
    return max({4: 8, 2: 16, 1: 32}.get(jnp.dtype(d).itemsize, 8) for d in dtypes)


# ----------------------------- MSE loss kernel ------------------------------

_MSE_COLS = 128                     # lane-dense; blocks cover full rows -> contiguous DMA
_MSE_TARGET_BLOCK_BYTES = 1 << 20   # ~1 MiB per input block (roofline plateau, v5e-safe)


def _mse_kernel(x_ref, y_ref, out_ref, *, n_rows, ragged):
    x = x_ref[...].astype(jnp.float32)          # on-chip cast; inputs arrive native dtype
    y = y_ref[...].astype(jnp.float32)
    d = x - y
    sq = d * d
    t, c = sq.shape
    if ragged:
        # Only the last grid step can be partial; garbage rows (unspecified
        # contents of the padded block) are zeroed before the reduction.
        row0 = pl.program_id(0) * t
        rid = jax.lax.broadcasted_iota(jnp.int32, (t, c), 0)
        sq = jnp.where(rid + row0 < n_rows, sq, 0.0)
    # Pure VPU vreg adds: fold the sublane-groups of the block into one (8, C)
    # partial; the single cross-lane reduce happens in the wrapper over all
    # per-block partials (removes the loop-carried scalar dependency).
    out_ref[0] = jnp.sum(sq.reshape(t // 8, 8, c), axis=0)


def mse_loss_pallas(model_output, target):
    n_elem = int(model_output.size)
    xf = model_output.reshape(-1)               # free (row-major contiguous)
    yf = target.reshape(-1)

    align = _sublane_align(xf.dtype, yf.dtype)
    n_main = (n_elem // _MSE_COLS) * _MSE_COLS
    rows = n_main // _MSE_COLS

    if rows < align:
        # Tiny input: not worth a kernel launch.
        d = xf.astype(jnp.float32) - yf.astype(jnp.float32)
        return jnp.sum(d * d) / n_elem

    tail_sum = jnp.float32(0.0)
    if n_main != n_elem:
        # Sub-128 tail handled with plain jnp; kernel runs over the aligned prefix.
        # TODO(synk): the prefix slice may still materialize a copy in XLA for
        #             non-128-multiple numels; only triggers on unaligned shapes.
        xt = xf[n_main:].astype(jnp.float32)
        yt = yf[n_main:].astype(jnp.float32)
        tail_sum = jnp.sum((xt - yt) ** 2)
        xf = xf[:n_main]
        yf = yf[:n_main]

    x2 = xf.reshape(rows, _MSE_COLS)
    y2 = yf.reshape(rows, _MSE_COLS)

    itemsize = max(x2.dtype.itemsize, y2.dtype.itemsize)
    max_rows = (_MSE_TARGET_BLOCK_BYTES // (_MSE_COLS * itemsize)) // align * align
    max_rows = max(max_rows, align)
    tile_rows = min(max_rows, (rows // align) * align)
    grid = _cdiv(rows, tile_rows)
    ragged = (rows % tile_rows) != 0

    bytes_accessed = n_main * (x2.dtype.itemsize + y2.dtype.itemsize) + grid * 8 * _MSE_COLS * 4
    partials = pl.pallas_call(
        functools.partial(_mse_kernel, n_rows=rows, ragged=ragged),
        out_shape=jax.ShapeDtypeStruct((grid, 8, _MSE_COLS), jnp.float32),
        grid=(grid,),
        in_specs=[
            pl.BlockSpec((tile_rows, _MSE_COLS), lambda i: (i, 0)),
            pl.BlockSpec((tile_rows, _MSE_COLS), lambda i: (i, 0)),
        ],
        out_specs=pl.BlockSpec((1, 8, _MSE_COLS), lambda i: (i, 0, 0)),
        compiler_params=pltpu.CompilerParams(dimension_semantics=("parallel",)),
        cost_estimate=pl.CostEstimate(
            flops=3 * n_main, transcendentals=0, bytes_accessed=bytes_accessed),
    )(x2, y2)

    return (jnp.sum(partials) + tail_sum) / n_elem


# ------------------------ CrossEntropy loss kernel ---------------------------

_CE_TARGET_BLOCK_BYTES = 1 << 20    # ~1 MiB logits block
_CE_MAX_TILE_ROWS = 16384


def _ce_kernel(logits_ref, tgt_ref, out_ref, *, n_rows, ragged):
    logits = logits_ref[...].astype(jnp.float32)          # (T, C), cast on-chip
    tgt = tgt_ref[...]                                     # (T, 1) int32
    t, c = logits.shape

    # Numerically-stable logsumexp, intermediates kept 2-D.
    row_max = jnp.max(logits, axis=1, keepdims=True)       # (T, 1)
    shifted = logits - row_max                              # (T, C)
    sumexp = jnp.sum(jnp.exp(shifted), axis=1, keepdims=True)

    # Gather logits[n, tgt[n]] via one-hot select (no dynamic gather on TPU);
    # row_max folds into the gather so per_row = log(sumexp) - picked_shifted.
    class_ids = jax.lax.broadcasted_iota(jnp.int32, (t, c), 1)
    onehot = class_ids == tgt
    picked_shifted = jnp.sum(jnp.where(onehot, shifted, 0.0), axis=1, keepdims=True)

    per_row = jnp.log(sumexp) - picked_shifted              # (T, 1)
    if ragged:
        row0 = pl.program_id(0) * t
        rid = jax.lax.broadcasted_iota(jnp.int32, (t, 1), 0)
        per_row = jnp.where(rid + row0 < n_rows, per_row, 0.0)

    out_ref[0] = jnp.sum(per_row.reshape(t // 8, 8, 1), axis=0)   # (8, 1) partial


def cross_entropy_loss_pallas(model_output, target):
    n, c = model_output.shape
    logits = model_output                                   # native dtype; cast inside kernel
    tgt = target.astype(jnp.int32).reshape(n, 1)

    align = _sublane_align(logits.dtype)
    if n < align:
        # Tiny batch: plain jnp fallback.
        lg = logits.astype(jnp.float32)
        row_max = jnp.max(lg, axis=1, keepdims=True)
        lse = jnp.log(jnp.sum(jnp.exp(lg - row_max), axis=1, keepdims=True)) + row_max
        picked = jnp.sum(jnp.where(
            jax.lax.broadcasted_iota(jnp.int32, lg.shape, 1) == tgt, lg, 0.0),
            axis=1, keepdims=True)
        return jnp.mean(lse - picked)

    # Adaptive tile_rows: keep the logits block near the target byte budget.
    max_rows = (_CE_TARGET_BLOCK_BYTES // (c * logits.dtype.itemsize)) // align * align
    max_rows = max(align, min(max_rows, _CE_MAX_TILE_ROWS))
    tile_rows = min(max_rows, (n // align) * align)
    grid = _cdiv(n, tile_rows)
    ragged = (n % tile_rows) != 0

    bytes_accessed = n * c * logits.dtype.itemsize + n * 4 + grid * 8 * 4
    partials = pl.pallas_call(
        functools.partial(_ce_kernel, n_rows=n, ragged=ragged),
        out_shape=jax.ShapeDtypeStruct((grid, 8, 1), jnp.float32),
        grid=(grid,),
        in_specs=[
            pl.BlockSpec((tile_rows, c), lambda i: (i, 0)),
            pl.BlockSpec((tile_rows, 1), lambda i: (i, 0)),
        ],
        out_specs=pl.BlockSpec((1, 8, 1), lambda i: (i, 0, 0)),
        compiler_params=pltpu.CompilerParams(dimension_semantics=("parallel",)),
        cost_estimate=pl.CostEstimate(
            flops=5 * n * c, transcendentals=n * c, bytes_accessed=bytes_accessed),
    )(logits, tgt)

    return jnp.sum(partials) / n


# --------------------------- Module-like wrapper -----------------------------

class SelfDesignedLossFunction:
    """JAX/Pallas port of Training_pkg.Model_Func.SelfDesigned_LossFunction."""

    def __init__(self, losstype, size_average=None, reduce=None, reduction: str = "mean"):
        # size_average / reduce / reduction are ignored (defaults => 'mean'), matching the spec.
        self.Loss_Type = losstype

    def __call__(self, model_output, target):
        if self.Loss_Type == "MSE":
            return mse_loss_pallas(model_output, target)
        elif self.Loss_Type == "CrossEntropyLoss":
            return cross_entropy_loss_pallas(model_output, target)
        # TODO(synk): PyTorch returns None for unknown loss types; mirror that.
        return None


# ---------------------------------- main -------------------------------------

if __name__ == "__main__":
    key = jax.random.PRNGKey(0)
    k1, k2, k3, k4, k5, k6, k7, k8 = jax.random.split(key, 8)

    mse_fn = SelfDesignedLossFunction("MSE")
    ce_fn = SelfDesignedLossFunction("CrossEntropyLoss")

    # --- MSE: f32 regression output, NCHW-shaped, numel multiple of 128 (no-copy path). ---
    x = jax.random.normal(k1, (2, 4, 16, 16), dtype=jnp.float32)
    y = jax.random.normal(k2, (2, 4, 16, 16), dtype=jnp.float32)
    mse = jax.block_until_ready(mse_fn(x, y))
    mse_ref = jnp.mean((x - y) ** 2)
    assert jnp.allclose(mse, mse_ref, rtol=1e-5, atol=1e-5), (mse, mse_ref)

    # --- MSE: bf16 inputs, unaligned numel (jnp tail + ragged last block path). ---
    xb = jax.random.normal(k3, (4, 6, 11, 13), dtype=jnp.bfloat16)
    yb = jax.random.normal(k4, (4, 6, 11, 13), dtype=jnp.bfloat16)
    mse_b = jax.block_until_ready(mse_fn(xb, yb))
    mse_b_ref = jnp.mean((xb.astype(jnp.float32) - yb.astype(jnp.float32)) ** 2)
    assert jnp.allclose(mse_b, mse_b_ref, rtol=1e-5, atol=1e-5), (mse_b, mse_b_ref)

    # --- CrossEntropy: f32 logits (N, C), N not a multiple of 8 (ragged last block). ---
    N, C = 10, 32
    logits = jax.random.normal(k5, (N, C), dtype=jnp.float32)
    labels = jax.random.randint(k6, (N,), 0, C, dtype=jnp.int32)
    ce = jax.block_until_ready(ce_fn(logits, labels))
    lse = jax.scipy.special.logsumexp(logits, axis=1)
    ce_ref = jnp.mean(lse - logits[jnp.arange(N), labels])
    assert jnp.allclose(ce, ce_ref, rtol=1e-5, atol=1e-5), (ce, ce_ref)

    # --- CrossEntropy: bf16 logits, aligned batch (native-dtype, single-block path). ---
    N2, C2 = 48, 40
    logits2 = jax.random.normal(k7, (N2, C2), dtype=jnp.bfloat16)
    labels2 = jax.random.randint(k8, (N2,), 0, C2, dtype=jnp.int32)
    ce2 = jax.block_until_ready(ce_fn(logits2, labels2))
    lg2 = logits2.astype(jnp.float32)
    lse2 = jax.scipy.special.logsumexp(lg2, axis=1)
    ce2_ref = jnp.mean(lse2 - lg2[jnp.arange(N2), labels2])
    assert jnp.allclose(ce2, ce2_ref, rtol=1e-5, atol=1e-5), (ce2, ce2_ref)

    print("KERNEL_OK")
</pallas_src>

<mosaic_0001>
module attributes {stable_mosaic.version = 11 : i64} {
  func.func @_mse_kernel(%arg0: i32, %arg1: memref<16x128xf32, #tpu.memory_space<vmem>>, %arg2: memref<16x128xf32, #tpu.memory_space<vmem>>, %arg3: memref<1x8x128xf32, #tpu.memory_space<vmem>>) attributes {dimension_semantics = [#tpu.dimension_semantics<parallel>], iteration_bounds = array<i64: 1>, scalar_prefetch = 0 : i64, scratch_operands = 0 : i64, tpu.core_type = #tpu.core_type<tc>, window_params = [{transform_indices = @transform_0, window_bounds = array<i64: 16, 128>}, {transform_indices = @transform_1, window_bounds = array<i64: 16, 128>}, {transform_indices = @transform_2, window_bounds = array<i64: 1, 8, 128>}]} {
    %c0 = arith.constant 0 : index
    %c0_0 = arith.constant 0 : index
    %0 = vector.load %arg1[%c0, %c0_0] : memref<16x128xf32, #tpu.memory_space<vmem>>, vector<16x128xf32>
    %c0_1 = arith.constant 0 : index
    %c0_2 = arith.constant 0 : index
    %1 = vector.load %arg2[%c0_1, %c0_2] : memref<16x128xf32, #tpu.memory_space<vmem>>, vector<16x128xf32>
    %2 = arith.subf %0, %1 : vector<16x128xf32>
    %3 = arith.mulf %2, %2 : vector<16x128xf32>
    %4 = vector.shape_cast %3 : vector<16x128xf32> to vector<2x8x128xf32>
    %cst = arith.constant dense<0.000000e+00> : vector<8x128xf32>
    %5 = vector.multi_reduction <add>, %4, %cst [0] : vector<2x8x128xf32> to vector<8x128xf32>
    %c0_3 = arith.constant 0 : index
    %c0_4 = arith.constant 0 : index
    %c0_5 = arith.constant 0 : index
    %6 = vector.load %arg3[%c0_3, %c0_4, %c0_5] : memref<1x8x128xf32, #tpu.memory_space<vmem>>, vector<1x8x128xf32>
    %7 = vector.shape_cast %6 : vector<1x8x128xf32> to vector<8x128xf32>
    %8 = vector.shape_cast %5 : vector<8x128xf32> to vector<1x8x128xf32>
    tpu.vector_store %arg3[%c0_3, %c0_4, %c0_5], %8 {strides = array<i32>} : memref<1x8x128xf32, #tpu.memory_space<vmem>>, vector<1x8x128xf32>,
    return
  }
  func.func @transform_0(%arg0: i32) -> (i32, i32) {
    %c0_i32 = arith.constant 0 : i32
    %c0_i32_0 = arith.constant 0 : i32
    return %arg0, %c0_i32 : i32, i32
  }
  func.func @transform_1(%arg0: i32) -> (i32, i32) {
    %c0_i32 = arith.constant 0 : i32
    %c0_i32_0 = arith.constant 0 : i32
    return %arg0, %c0_i32 : i32, i32
  }
  func.func @transform_2(%arg0: i32) -> (i32, i32, i32) {
    %c0_i32 = arith.constant 0 : i32
    %c0_i32_0 = arith.constant 0 : i32
    %c0_i32_1 = arith.constant 0 : i32
    return %arg0, %c0_i32, %c0_i32_0 : i32, i32, i32
  }
}

</mosaic_0001>

<bundles_post_ra>
// kernel: tpu_custom_call.1
= control target key start
LH: loop header
LB: loop body
LE: loop exit
PB: predicated region body
PF: predicated region fallthrough
CT: control target
= control target key end

     0   :  { %7 = vsyncpa [#allocation3], 0  ;;  %s199_s0 = inlined_call_operand.hbm [shape: f32[16,128], index: 0, kind: input, shape index: {}]   ;;  %s200_s1 = inlined_call_operand.hbm [shape: f32[16,128], index: 1, kind: input, shape index: {}]   ;;  %s201_s2 = inlined_call_operand.hbm [shape: f32[1,8,128], index: 2, kind: output, shape index: {}]  }
   0x1   :  { %8 = vsyncpa [#allocation6], 0 }
   0x2   :  { %9 = vsyncpa [#allocation4], 0  ;;  %s143_s9 = smov [#allocation2]   ;;  %s71_s13 = scalar_lea.hbm %s199_s0, 256 }
   0x3   :  { %s15_s10 = sshll.u32 %s143_s9, 4  ;;  %p72_p0 = scmp.ne.s32.totalorder %s199_s0, %s71_s13  ;;  %s16_s10 = int_to_ptr.vmem [resolvable:$true] %s15_s10 }
   0x4   :  { %p75_p1 = scmp.lt.u32.totalorder %s71_s13, %s199_s0 }
   0x6   :  { %p77_p2 = pnand %p75_p1, %p72_p0 }
   0x8   :  { %80 = shalt.err (!%p77_p2)
}
   0x9   :  { %s81_s18 = scalar_lea.vmem %s16_s10, 256  ;;  %p86_p4 = scmp.lt.s32.totalorder %s16_s10, %s16_s10 }
   0xa   :  { %p82_p3 = scmp.ne.s32.totalorder %s16_s10, %s81_s18  ;;  %p87_p5 = scmp.lt.s32.totalorder %s81_s18, %s81_s18 }
   0xc   :  { %p88_p6 = por %p87_p5, %p86_p4 }
   0xe   :  { %p89_p7 = pnand %p88_p6, %p82_p3 }
  0x10   :  { %92 = shalt.err (!%p89_p7)
}
  0x11   :  { %s144_s19 = smov 128   ;;  %s145_s20 = smov 8  }
  0x12   :  { %21 = dma.hbm_to_vmem [thread:$0]  %s199_s0, 256, %s16_s10, [#allocation3], %s144_s19, %s144_s19, %s145_s20  }
  0x13   :  { %s146_s23 = smov [#allocation5]   ;;  %s93_s27 = scalar_lea.hbm %s200_s1, 256 }
  0x14   :  { %s27_s24 = sshll.u32 %s146_s23, 4  ;;  %p94_p8 = scmp.ne.s32.totalorder %s200_s1, %s93_s27  ;;  %s28_s24 = int_to_ptr.vmem [resolvable:$true] %s27_s24 }
  0x15   :  { %p97_p9 = scmp.lt.u32.totalorder %s93_s27, %s200_s1 }
  0x17   :  { %p99_p10 = pnand %p97_p9, %p94_p8 }
  0x19   :  { %102 = shalt.err (!%p99_p10)
}
  0x1a   :  { %s103_s4 = scalar_lea.vmem %s28_s24, 256  ;;  %p108_p12 = scmp.lt.s32.totalorder %s28_s24, %s28_s24 }
  0x1b   :  { %p104_p11 = scmp.ne.s32.totalorder %s28_s24, %s103_s4  ;;  %p109_p13 = scmp.lt.s32.totalorder %s103_s4, %s103_s4 }
  0x1d   :  { %p110_p0 = por %p109_p13, %p108_p12 }
  0x1f   :  { %p111_p1 = pnand %p110_p0, %p104_p11 }
  0x21   :  { %114 = shalt.err (!%p111_p1)
}
  0x22   :  { %33 = dma.hbm_to_vmem [thread:$0]  %s200_s1, 256, %s28_s24, [#allocation6], %s144_s19, %s144_s19, %s145_s20  }
  0x23   :  { %137 = dma.done.wait [#allocation3], 256  }
  0x24   :  { %138 = vsyncadd [#allocation3], 4294967040 }
  0x25   :  { %139 = dma.done.wait [#allocation6], 256  }
  0x26   :  { %140 = vsyncadd [#allocation6], 4294967040  ;;  %v40_v0 = vld [vmem:[#allocation2] sm:$0xff]  ;;  %v41_v1 = vld [vmem:[#allocation2 + $0x8] sm:$0xff]  ;;  %s147_s6 = smov [#allocation7]  }
  0x27   :  { %v42_v2 = vld [vmem:[#allocation5] sm:$0xff]  ;;  %v43_v3 = vld [vmem:[#allocation5 + $0x8] sm:$0xff]  ;;  %s56_s7 = sshll.u32 %s147_s6, 4  ;;  %s57_s7 = int_to_ptr.vmem [resolvable:$true] %s56_s7 }
  0x28   :  { %v44_v4 = vsub.f32 %v40_v0, %v42_v2  ;;  %v45_v5 = vsub.f32 %v41_v1, %v43_v3  ;;  %s115_s8 = scalar_lea.vmem %s57_s7, 128  ;;  %p120_p3 = scmp.lt.s32.totalorder %s57_s7, %s57_s7 }
  0x29   :  { %p116_p2 = scmp.ne.s32.totalorder %s57_s7, %s115_s8  ;;  %p121_p4 = scmp.lt.s32.totalorder %s115_s8, %s115_s8 }
  0x2a   :  { %v46_v6 = vmul.f32 %v44_v4, %v44_v4  ;;  %v47_v7 = vmul.f32 %v45_v5, %v45_v5 }
  0x2b   :  { %p122_p5 = por %p121_p4, %p120_p3 }
  0x2c   :  { %v48_v8 = vadd.f32 %v47_v7, %v46_v6 }
  0x2d   :  { %p123_p6 = pnand %p122_p5, %p116_p2 }
  0x2e   :  { %49 = vst [vmem:[#allocation7] sm:$0xff] %v48_v8 }
  0x2f   :  { %126 = shalt.err (!%p123_p6)
}
  0x30   :  { %s127_s10 = scalar_lea.hbm %s201_s2, 128 }
  0x31   :  { %p128_p7 = scmp.ne.s32.totalorder %s201_s2, %s127_s10  ;;  %p131_p8 = scmp.lt.u32.totalorder %s127_s10, %s201_s2 }
  0x33   :  { %p133_p9 = pnand %p131_p8, %p128_p7 }
  0x35   :  { %136 = shalt.err (!%p133_p9)
}
  0x36   :  { %59 = dma.vmem_to_hbm [thread:$0]  %s57_s7, 128, %s201_s2, [#allocation4]  }
  0x37   :  { %141 = dma.done.wait [#allocation4], 128  }
  0x38   :  { %142 = vsyncadd [#allocation4], 4294967168 }
  0x39   :  { %63 = vsyncpa [#allocation3], 1 }
  0x3a   :  { %64 = vsyncpa [#allocation6], 1 }
  0x3b   :  { %65 = vsyncpa [#allocation4], 1 }

</bundles_post_ra>
